<compile_context>
chip_gen: v7x
topology: tpu7x:2x2x1
jax: 0.10.0
libtpu: 0.0.40
codegen_flags: <defaults>
</compile_context>

<pallas_src>
import functools

import jax
import jax.numpy as jnp
from jax.experimental import pallas as pl
from jax.experimental.pallas import tpu as pltpu


def _soft_ce_kernel(x_ref, t_ref, out_ref, *, ignore_index):
    x = x_ref[0].astype(jnp.float32)        # (C, TL): classes on sublanes, spatial on lanes
    t = t_ref[0]                            # (1, TL) int32
    C = x.shape[0]

    # numerically-stable logsumexp over the class (sublane) axis
    m = jnp.max(x, axis=0, keepdims=True)                                   # (1, TL)
    lse = jnp.log(jnp.sum(jnp.exp(x - m), axis=0, keepdims=True)) + m       # (1, TL)
    sum_x = jnp.sum(x, axis=0, keepdims=True)                               # (1, TL)

    # gather x[target] via one-hot compare (ignore_index / padding matches no class -> 0)
    cls = jax.lax.broadcasted_iota(jnp.int32, x.shape, 0)                   # (C, TL)
    x_t = jnp.sum(jnp.where(cls == t, x, 0.0), axis=0, keepdims=True)       # (1, TL)

    valid = (t != ignore_index).astype(jnp.float32)                         # (1, TL)
    nll = (lse - x_t) * valid               # = -log_softmax(x)[target]
    smooth = (C * lse - sum_x) * valid      # = -sum_c log_softmax(x)

    nll_s = jnp.sum(nll)
    sm_s = jnp.sum(smooth)

    # (2, 128) partial tile: row 0 = nll partial, row 1 = smooth partial (lane-broadcast;
    # the wrapper reads lane 0).  One full-lane unmasked store per grid step, no RMW.
    row = jax.lax.broadcasted_iota(jnp.int32, (2, 128), 0)
    tile = jnp.where(row == 0, nll_s, sm_s)
    out_ref[...] = tile.reshape(out_ref.shape)


def soft_cross_entropy_loss(input_nchw, target_nhw, *, smooth_factor=0.0,
                            ignore_index=-100, reduction="mean",
                            tl_max=2048, block_budget_bytes=2 * 1024 * 1024):
    """Matches SoftCrossEntropyLoss.forward (dim=1) for NCHW logits and NHW int targets."""
    N, C, H, W = input_nchw.shape
    L = H * W
    M = N * L                                        # true number of positions
    ii = -1 if ignore_index is None else int(ignore_index)

    x = input_nchw.reshape(N, C, L)                  # free view, native layout (no transpose)
    t = target_nhw.reshape(N, 1, L).astype(jnp.int32)

    # Lane tile: multiple of 128, sized so one (C, TL) input buffer stays within budget.
    itemsize = jnp.dtype(input_nchw.dtype).itemsize
    tl = (block_budget_bytes // max(1, C * itemsize)) // 128 * 128
    tl = int(max(128, min(tl_max, tl)))
    if L <= tl:
        tl = max(128, -(-L // 128) * 128)            # round L up to a lane multiple
    L_pad = -(-L // tl) * tl
    if L_pad != L:
        x = jnp.pad(x, ((0, 0), (0, 0), (0, L_pad - L)))
        t = jnp.pad(t, ((0, 0), (0, 0), (0, L_pad - L)), constant_values=ii)
    S = L_pad // tl

    kernel = functools.partial(_soft_ce_kernel, ignore_index=ii)
    # Explicit VMEM budget (v7x has only 64 MiB physical; double-buffered inputs must fit).
    vmem_limit = int(min(64 * 2**20, max(32 * 2**20, 4 * C * tl * itemsize)))

    partials = pl.pallas_call(
        kernel,
        out_shape=jax.ShapeDtypeStruct((N, S, 2, 128), jnp.float32),
        grid_spec=pltpu.PrefetchScalarGridSpec(
            num_scalar_prefetch=0,
            grid=(N, S),
            in_specs=[
                pl.BlockSpec((1, C, tl), lambda n, s: (n, 0, s)),
                pl.BlockSpec((1, 1, tl), lambda n, s: (n, 0, s)),
            ],
            out_specs=pl.BlockSpec((1, 1, 2, 128), lambda n, s: (n, s, 0, 0)),
        ),
        compiler_params=pltpu.CompilerParams(
            dimension_semantics=("parallel", "parallel"),
            vmem_limit_bytes=vmem_limit),
    )(x, t)

    nll_total = jnp.sum(partials[:, :, 0, 0])
    sm_total = jnp.sum(partials[:, :, 1, 0])

    if reduction == "mean":
        # pytorch-toolbelt label_smoothed_nll_loss semantics: mean over ALL positions
        # (ignored positions count in the denominator but contribute 0 to the numerator).
        nll_red = nll_total / M
        sm_red = sm_total / M
    elif reduction == "sum":
        nll_red = nll_total
        sm_red = sm_total
    else:
        # TODO(synk): reduction='none' needs a per-position output path, not implemented here.
        raise NotImplementedError("only 'mean' and 'sum' reductions are supported")

    eps = smooth_factor
    return (1.0 - eps) * nll_red + (eps / C) * sm_red


def _reference(input_nchw, target_nhw, smooth_factor, ignore_index, reduction):
    # pure-JAX reference mirroring F.log_softmax + label_smoothed_nll_loss
    N, C, H, W = input_nchw.shape
    x = jnp.transpose(input_nchw, (0, 2, 3, 1)).reshape(-1, C).astype(jnp.float32)
    t = target_nhw.reshape(-1)
    logp = jax.nn.log_softmax(x, axis=-1)
    pad = t == ignore_index
    t_safe = jnp.where(pad, 0, t)
    nll = -jnp.take_along_axis(logp, t_safe[:, None], axis=-1)[:, 0]
    smooth = -jnp.sum(logp, axis=-1)
    nll = jnp.where(pad, 0.0, nll)
    smooth = jnp.where(pad, 0.0, smooth)
    if reduction == "mean":
        nll, smooth = jnp.mean(nll), jnp.mean(smooth)
    else:
        nll, smooth = jnp.sum(nll), jnp.sum(smooth)
    return (1.0 - smooth_factor) * nll + (smooth_factor / C) * smooth


if __name__ == "__main__":
    key = jax.random.PRNGKey(0)
    k1, k2, k3 = jax.random.split(key, 3)

    N, C, H, W = 2, 8, 16, 16
    smooth_factor = 0.1
    ignore_index = -100

    logits = jax.random.normal(k1, (N, C, H, W), dtype=jnp.float32)
    target = jax.random.randint(k2, (N, H, W), 0, C, dtype=jnp.int32)
    # sprinkle some ignored positions
    ignore_mask = jax.random.uniform(k3, (N, H, W)) < 0.1
    target = jnp.where(ignore_mask, ignore_index, target)

    loss = soft_cross_entropy_loss(
        logits, target, smooth_factor=smooth_factor,
        ignore_index=ignore_index, reduction="mean")
    jax.block_until_ready(loss)

    ref = _reference(logits, target, smooth_factor, ignore_index, "mean")
    assert jnp.allclose(loss, ref, rtol=1e-5, atol=1e-5), (loss, ref)

    loss_sum = soft_cross_entropy_loss(
        logits, target, smooth_factor=smooth_factor,
        ignore_index=ignore_index, reduction="sum")
    ref_sum = _reference(logits, target, smooth_factor, ignore_index, "sum")
    assert jnp.allclose(loss_sum, ref_sum, rtol=1e-5, atol=1e-4), (loss_sum, ref_sum)

    print("KERNEL_OK")
</pallas_src>

<mosaic_0001>
module attributes {stable_mosaic.version = 11 : i64} {
  func.func @_soft_ce_kernel(%arg0: i32, %arg1: i32, %arg2: memref<1x8x256xf32, #tpu.memory_space<vmem>>, %arg3: memref<1x1x256xi32, #tpu.memory_space<vmem>>, %arg4: memref<1x1x2x128xf32, #tpu.memory_space<vmem>>) attributes {dimension_semantics = [#tpu.dimension_semantics<parallel>, #tpu.dimension_semantics<parallel>], iteration_bounds = array<i64: 2, 1>, scalar_prefetch = 0 : i64, scratch_operands = 0 : i64, tpu.core_type = #tpu.core_type<tc>, window_params = [{transform_indices = @transform_0, window_bounds = array<i64: 1, 8, 256>}, {transform_indices = @transform_1, window_bounds = array<i64: 1, 1, 256>}, {transform_indices = @transform_2, window_bounds = array<i64: 1, 1, 2, 128>}]} {
    %c0 = arith.constant 0 : index
    %c0_0 = arith.constant 0 : index
    %c0_1 = arith.constant 0 : index
    %0 = vector.load %arg2[%c0, %c0_0, %c0_1] : memref<1x8x256xf32, #tpu.memory_space<vmem>>, vector<1x8x256xf32>
    %1 = vector.shape_cast %0 : vector<1x8x256xf32> to vector<8x256xf32>
    %c0_2 = arith.constant 0 : index
    %c0_3 = arith.constant 0 : index
    %c0_4 = arith.constant 0 : index
    %2 = vector.load %arg3[%c0_2, %c0_3, %c0_4] : memref<1x1x256xi32, #tpu.memory_space<vmem>>, vector<1x1x256xi32>
    %3 = vector.shape_cast %2 : vector<1x1x256xi32> to vector<1x256xi32>
    %cst = arith.constant dense<0xFF800000> : vector<256xf32>
    %4 = vector.multi_reduction <maximumf>, %1, %cst [0] : vector<8x256xf32> to vector<256xf32>
    %5 = vector.shape_cast %4 : vector<256xf32> to vector<1x256xf32>
    %6 = vector.broadcast %5 : vector<1x256xf32> to vector<8x256xf32>
    %7 = arith.subf %1, %6 : vector<8x256xf32>
    %8 = math.exp %7 : vector<8x256xf32>
    %cst_5 = arith.constant dense<0.000000e+00> : vector<256xf32>
    %9 = vector.multi_reduction <add>, %8, %cst_5 [0] : vector<8x256xf32> to vector<256xf32>
    %10 = vector.shape_cast %9 : vector<256xf32> to vector<1x256xf32>
    %11 = math.log %10 : vector<1x256xf32>
    %12 = arith.addf %11, %5 : vector<1x256xf32>
    %cst_6 = arith.constant dense<0.000000e+00> : vector<256xf32>
    %13 = vector.multi_reduction <add>, %1, %cst_6 [0] : vector<8x256xf32> to vector<256xf32>
    %14 = vector.shape_cast %13 : vector<256xf32> to vector<1x256xf32>
    %15 = tpu.iota {dimensions = array<i32: 0>} : vector<8x256xi32>
    %16 = vector.broadcast %3 : vector<1x256xi32> to vector<8x256xi32>
    %17 = arith.cmpi eq, %15, %16 : vector<8x256xi32>
    %cst_7 = arith.constant 0.000000e+00 : f32
    %18 = vector.broadcast %cst_7 : f32 to vector<8x256xf32>
    %19 = arith.select %17, %1, %18 : vector<8x256xi1>, vector<8x256xf32>
    %cst_8 = arith.constant dense<0.000000e+00> : vector<256xf32>
    %20 = vector.multi_reduction <add>, %19, %cst_8 [0] : vector<8x256xf32> to vector<256xf32>
    %21 = vector.shape_cast %20 : vector<256xf32> to vector<1x256xf32>
    %c-100_i32 = arith.constant -100 : i32
    %22 = vector.broadcast %c-100_i32 : i32 to vector<1x256xi32>
    %23 = arith.cmpi ne, %3, %22 : vector<1x256xi32>
    %24 = arith.extui %23 : vector<1x256xi1> to vector<1x256xi32>
    %25 = arith.sitofp %24 : vector<1x256xi32> to vector<1x256xf32>
    %26 = arith.subf %12, %21 : vector<1x256xf32>
    %27 = arith.mulf %26, %25 : vector<1x256xf32>
    %cst_9 = arith.constant 8.000000e+00 : f32
    %28 = vector.broadcast %cst_9 : f32 to vector<1x256xf32>
    %29 = arith.mulf %28, %12 : vector<1x256xf32>
    %30 = arith.subf %29, %14 : vector<1x256xf32>
    %31 = arith.mulf %30, %25 : vector<1x256xf32>
    %32 = vector.shape_cast %27 : vector<1x256xf32> to vector<1x1x256xf32>
    %cst_10 = arith.constant dense<0.000000e+00> : vector<1xf32>
    %33 = vector.multi_reduction <add>, %32, %cst_10 [1, 2] : vector<1x1x256xf32> to vector<1xf32>
    %34 = vector.shape_cast %33 : vector<1xf32> to vector<1x1x1xf32>
    %35 = vector.extract %34[0, 0, 0] : f32 from vector<1x1x1xf32>
    %36 = vector.shape_cast %31 : vector<1x256xf32> to vector<1x1x256xf32>
    %cst_11 = arith.constant dense<0.000000e+00> : vector<1xf32>
    %37 = vector.multi_reduction <add>, %36, %cst_11 [1, 2] : vector<1x1x256xf32> to vector<1xf32>
    %38 = vector.shape_cast %37 : vector<1xf32> to vector<1x1x1xf32>
    %39 = vector.extract %38[0, 0, 0] : f32 from vector<1x1x1xf32>
    %40 = tpu.iota {dimensions = array<i32: 0>} : vector<2x128xi32>
    %c0_i32 = arith.constant 0 : i32
    %41 = vector.broadcast %c0_i32 : i32 to vector<2x128xi32>
    %42 = arith.cmpi eq, %40, %41 : vector<2x128xi32>
    %43 = vector.broadcast %35 : f32 to vector<2x128xf32>
    %44 = vector.broadcast %39 : f32 to vector<2x128xf32>
    %45 = arith.select %42, %43, %44 : vector<2x128xi1>, vector<2x128xf32>
    %46 = vector.shape_cast %45 : vector<2x128xf32> to vector<1x1x2x128xf32>
    %c0_12 = arith.constant 0 : index
    %c0_13 = arith.constant 0 : index
    %c0_14 = arith.constant 0 : index
    %c0_15 = arith.constant 0 : index
    %47 = vector.load %arg4[%c0_12, %c0_13, %c0_14, %c0_15] : memref<1x1x2x128xf32, #tpu.memory_space<vmem>>, vector<1x1x2x128xf32>
    tpu.vector_store %arg4[%c0_12, %c0_13, %c0_14, %c0_15], %46 {strides = array<i32>} : memref<1x1x2x128xf32, #tpu.memory_space<vmem>>, vector<1x1x2x128xf32>,
    return
  }
  func.func @transform_0(%arg0: i32, %arg1: i32) -> (i32, i32, i32) {
    %c0_i32 = arith.constant 0 : i32
    %c0_i32_0 = arith.constant 0 : i32
    return %arg0, %c0_i32, %arg1 : i32, i32, i32
  }
  func.func @transform_1(%arg0: i32, %arg1: i32) -> (i32, i32, i32) {
    %c0_i32 = arith.constant 0 : i32
    %c0_i32_0 = arith.constant 0 : i32
    return %arg0, %c0_i32, %arg1 : i32, i32, i32
  }
  func.func @transform_2(%arg0: i32, %arg1: i32) -> (i32, i32, i32, i32) {
    %c0_i32 = arith.constant 0 : i32
    %c0_i32_0 = arith.constant 0 : i32
    %c0_i32_1 = arith.constant 0 : i32
    return %arg0, %arg1, %c0_i32, %c0_i32_0 : i32, i32, i32, i32
  }
}

</mosaic_0001>

<bundles_post_ra>
// kernel: tpu_custom_call.1
= control target key start
LH: loop header
LB: loop body
LE: loop exit
PB: predicated region body
PF: predicated region fallthrough
CT: control target
= control target key end

     0   :  { %7 = vsyncpa [#allocation3], 0  ;;  %s974_s0 = inlined_call_operand.hbm [shape: f32[2,8,256], index: 0, kind: input, shape index: {}]   ;;  %s975_s1 = inlined_call_operand.hbm [shape: s32[2,1,256], index: 1, kind: input, shape index: {}]   ;;  %s976_s2 = inlined_call_operand.hbm [shape: f32[2,1,2,128], index: 2, kind: output, shape index: {}]  }
   0x1   :  { %9 = vsyncpa [#allocation3 + $0x1], 0 }
   0x2   :  { %10 = vsyncpa [#allocation6], 0 }
   0x3   :  { %12 = vsyncpa [#allocation6 + $0x1], 0 }
   0x4   :  { %13 = vsyncpa [#allocation4], 0 }
   0x5   :  { %15 = vsyncpa [#allocation4 + $0x1], 0  ;;  %s744_s9 = smov 0   ;;  %s746_s10 = smov 0  }
   0x6   :  { %s748_s11 = smov 0   ;;  %s750_s12 = smov 0  }
   0x7   :  { %s752_s13 = smov 0   ;;  %s754_s14 = smov 0  }
   0x8 LB: > { %s476_s15 = sadd.s32 4294967295, %s723_s14   ;;  %s477_s16 = sadd.s32 4294967294, %s723_s14   ;;  %s723_s14 = sphi %s754_s14, %s21_s14   ;;  %s719_s13 = sphi %s752_s13, %s996_s13   ;;  %s715_s12 = sphi %s750_s12, %s995_s12   ;;  %s711_s11 = sphi %s748_s11, %s994_s11   ;;  %s707_s10 = sphi %s746_s10, %s993_s10   ;;  %s703_s9 = sphi %s744_s9, %s992_s9  }
   0x9   : > { %s33_s17 = sadd.s32 1, %s719_s13  ;;  %s42_s18 = sadd.s32 1, %s711_s11 }
   0xa   : > { %p35_p0 = scmp.ge.s32.totalorder %s33_s17, 2  ;;  %p49_p1 = scmp.ne.s32.totalorder %s711_s11, %s707_s10 }
   0xb   : > { %p50_p2 = scmp.eq.s32.totalorder %s723_s14, 0  ;;  %p55_p3 = scmp.ne.s32.totalorder %s707_s10, %s703_s9 }
   0xc   : > { %s998_s17 = smov (%p35_p0, %s33_s17), 0  ;;  %p56_p5 = scmp.eq.s32.totalorder %s476_s15, 0 }
   0xd   : > { %p785_p4 = por %p50_p2, %p49_p1  ;;  %s37_s20 = ssub.s32 %s719_s13, %s998_s17 }
   0xe   : > { %p109_p6 = scmp.eq.s32.totalorder %s476_s15, 1  ;;  %p40_p7 = scmp.eq.s32.totalorder %s37_s20, 0 }
   0xf   : > { %p791_p8 = por %p56_p5, %p55_p3  ;;  %p115_p10 = scmp.eq.s32.totalorder %s477_s16, 1 }
  0x10   : > { %p795_p9 = por %p109_p6, %p49_p1  ;;  %p518_p13 = scmp.lt.s32.totalorder %s723_s14, 2 }
  0x11   : > { %s980_s21 = scalar_select %p791_p8, 1, 0 }
  0x12   : > { %s981_s22 = scalar_select %p795_p9, 1, 0 }
  0x13   : > { %s800_s23 = scalar_select %p40_p7, %s711_s11, %s42_s18  }
  0x14   : > { %p802_p11 = por %p115_p10, %p55_p3  ;;  %s809_s25 = sand.u32 1, %s711_s11  }
  0x15   : > { %s480_s26 = sshll.u32 %s809_s25, 4  ;;  %s495_s27 = sshll.u32 %s719_s13, 8 }
  0x16   : > { %s982_s24 = scalar_select %p802_p11, 1, 0 }
  0x17   : > { %s816_s30 = scalar_lea.hbm %s974_s0, %s495_s27  ;;  %s139_s3 = scalar_lea.vmem [#allocation2], %s480_s26 }
  0x18   : > { %s149_s4 = sshll.u32 %s139_s3, 4  ;;  %p822_p0 = pnand %p518_p13, %p785_p4  ;;  %s818_s4 = int_to_ptr.vmem [resolvable:$true] %s149_s4 }
  0x19   : > { %s136_s6 = scalar_lea.sflag [#allocation3], %s809_s25  ;;  %s577_s7 = scalar_lea.hbm %s816_s30, 256 }
  0x1a   : > { %p578_p3 = scmp.ne.s32.totalorder %s816_s30, %s577_s7  ;;  %p579_p5 = pneg %p822_p0 }
  0x1b   : > { %s582_s16 = scalar_lea.hbm %s974_s0, 512  ;;  %p583_p4 = scmp.lt.u32.totalorder %s816_s30, %s974_s0 }
  0x1c   : > { %p580_p6 = pnand %p579_p5, %p578_p3  ;;  %p584_p10 = scmp.lt.u32.totalorder %s582_s16, %s577_s7 }
  0x1d   : > { %p586_p12 = scmp.lt.u32.totalorder %s577_s7, %s816_s30 }
  0x1e   : > { %p581_p7 = pneg %p580_p6  ;;  %p585_p13 = por %p584_p10, %p583_p4 }
  0x20   : > { %p587_p1 = por %p586_p12, %p585_p13 }
  0x22   : > { %p588_p2 = pnand %p587_p1, %p581_p7 }
  0x24   : > { %591 = shalt.err (!%p588_p2)
}
  0x25   : > { %s592_s20 = scalar_lea.vmem %s818_s4, 256  ;;  %s725_s26 = smov [#allocation2]  }
  0x26   : > { %p593_p3 = scmp.ne.s32.totalorder %s818_s4, %s592_s20  ;;  %s597_s27 = sshll.u32 %s725_s26, 4  ;;  %s598_s27 = int_to_ptr.vmem [resolvable:$false] %s597_s27 }
  0x27   : > { %s599_s28 = scalar_lea.vmem %s598_s27, 512  ;;  %p600_p9 = scmp.lt.s32.totalorder %s818_s4, %s598_s27 }
  0x28   : > { %p595_p6 = pnand %p593_p3, %p579_p5  ;;  %p601_p4 = scmp.lt.s32.totalorder %s599_s28, %s592_s20 }
  0x2a   : > { %p596_p11 = pneg %p595_p6  ;;  %p602_p10 = por %p601_p4, %p600_p9 }
  0x2c   : > { %p603_p12 = pnand %p602_p10, %p596_p11 }
  0x2e   : > { %606 = shalt.err (!%p603_p12)
}
  0x2f   : > { %510 = dma.hbm_to_vmem [thread:$0]  (!%p822_p0), %s816_s30, 256, %s818_s4, %s136_s6  }
  0x30   : > { %p984_p1 = scmp.lt.s32.totalorder %s723_s14, 3  ;;  %p985_p2 = scmp.ge.s32.totalorder %s723_s14, 1 }
  0x31   : > { %s483_s3 = sshll.u32 %s809_s25, 1  ;;  %s496_s7 = sshll.u32 %s719_s13, 5 }
  0x32   : > { %p858_p7 = pnand %p985_p2, %p984_p1  ;;  %s867_s16 = scalar_lea.hbm %s975_s1, %s496_s7 }
  0x33   : > { %s160_s18 = scalar_lea.vmem [#allocation5], %s483_s3  ;;  %s157_s30 = scalar_lea.sflag [#allocation6], %s809_s25 }
  0x34   : > { %s986_s29 = scalar_select %p858_p7, 1, 0 }
  0x35   : > { %s170_s19 = sshll.u32 %s160_s18, 4  ;;  %s607_s4 = scalar_lea.hbm %s867_s16, 32  ;;  %s171_s19 = int_to_ptr.vmem [resolvable:$true] %s170_s19 }
  0x36   : > { %p608_p9 = scmp.ne.s32.totalorder %s867_s16, %s607_s4  ;;  %s612_s26 = scalar_lea.hbm %s975_s1, 64 }
  0x37   : > { %p613_p3 = scmp.lt.u32.totalorder %s867_s16, %s975_s1  ;;  %p614_p6 = scmp.lt.u32.totalorder %s612_s26, %s607_s4 }
  0x38   : > { %p610_p11 = pnand %p608_p9, %p579_p5  ;;  %p616_p10 = scmp.lt.u32.totalorder %s607_s4, %s867_s16 }
  0x39   : > { %p615_p4 = por %p614_p6, %p613_p3 }
  0x3a   : > { %p611_p13 = pneg %p610_p11 }
  0x3b   : > { %p617_p12 = por %p616_p10, %p615_p4 }
  0x3d   : > { %p618_p1 = pnand %p617_p12, %p611_p13 }
  0x3f   : > { %621 = shalt.err (!%p618_p1)
}
  0x40   : > { %s622_s25 = scalar_lea.vmem %s171_s19, 32  ;;  %s726_s3 = smov [#allocation5]  }
  0x41   : > { %p623_p2 = scmp.ne.s32.totalorder %s171_s19, %s622_s25  ;;  %s627_s7 = sshll.u32 %s726_s3, 4  ;;  %s628_s7 = int_to_ptr.vmem [resolvable:$false] %s627_s7 }
  0x42   : > { %s629_s8 = scalar_lea.vmem %s628_s7, 64  ;;  %p630_p8 = scmp.lt.s32.totalorder %s171_s19, %s628_s7 }
  0x43   : > { %p625_p9 = pnand %p623_p2, %p579_p5  ;;  %p631_p7 = scmp.lt.s32.totalorder %s629_s8, %s622_s25 }
  0x45   : > { %p626_p11 = pneg %p625_p9  ;;  %p632_p3 = por %p631_p7, %p630_p8 }
  0x47   : > { %p633_p6 = pnand %p632_p3, %p626_p11 }
  0x49   : > { %636 = shalt.err (!%p633_p6)
}
  0x4a   : > { %513 = dma.hbm_to_vmem [thread:$0]  (!%p822_p0), %s867_s16, 32, %s171_s19, %s157_s30  }
  0x4b   : > { %p987_p13 = scmp.ne.s32.totalorder %s986_s29, 0 }
  0x4c   : > { %s892_s15 = sand.u32 (!%p987_p13), 1, %s707_s10   ;;  %p988_p5 = scmp.ne.s32.totalorder (!%p987_p13), %s980_s21, 0 }
  0x4d   : > { %179 = sbr.rel (%p987_p13) target bundleno = 375 (0x177), region = 28  ;;  %s487_s18 = sshll.u32 (!%p987_p13), %s892_s15, 4 }
  0x4e   : > { %s182_s4 = scalar_lea.sflag (!%p987_p13), [#allocation3], %s892_s15  ;;  %s185_s6 = scalar_lea.vmem (!%p987_p13), [#allocation2], %s487_s18 }
  0x54   : > { %690 = dma.done.wait (%p988_p5), %s182_s4, 256  }
  0x55   : > { %692 = vsyncadd (%p988_p5), %s182_s4, 4294967040  ;;  %s488_s5 = sshll.u32 %s892_s15, 1  ;;  %s191_s29 = scalar_lea.sflag [#allocation6], %s892_s15 }
  0x56   : > { %s194_s16 = scalar_lea.vmem [#allocation5], %s488_s5 }
  0x57   : > { %694 = dma.done.wait (%p988_p5), %s191_s29, 32  }
  0x58   : > { %696 = vsyncadd (%p988_p5), %s191_s29, 4294967264  ;;  %v222_v0 = vld [vmem:[%s185_s6] sm:$0xff]  ;;  %v223_v1 = vld [vmem:[%s185_s6 + $0x8] sm:$0xff]  ;;  %v273_v12 = vlaneseq  ;;  %v727_v59 = vmov 0.0   ;;  %vm323_vm3 = vcmask 1040384   ;;  %s492_s21 = sshll.u32 %s715_s12, 5 }
  0x59   : > { %v225_v2 = vrot.slane %v222_v0, 4  ;;  %v231_v3 = vrot.slane %v223_v1, 4  ;;  %v224_v21 = vld [vmem:[%s194_s16] sm:$0x3]  ;;  %s219_s30 = scalar_lea.vmem [#allocation7], %s488_s5  ;;  %s925_s25 = scalar_lea.hbm %s976_s2, %s492_s21 }
  0x5a   : > { %v911_v17 = vshrl.u32 %v273_v12, 7  ;;  %vm299_vm2 = vcmp.ne.s32.totalorder %v224_v21, 4294967196  ;;  %s368_s20 = sshll.u32 %s219_s30, 4  ;;  %s354_s12 = scalar_lea.sflag [#allocation4], %s892_s15  ;;  %s927_s20 = int_to_ptr.vmem [resolvable:$true] %s368_s20 }
  0x5b   : > { %v226_v4 = vmax.f32 %v222_v0, %v225_v2  ;;  %v232_v5 = vmax.f32 %v223_v1, %v231_v3  ;;  %v262_v43 = vadd.f32 %v225_v2, %v222_v0  ;;  %v268_v45 = vadd.f32 %v231_v3, %v223_v1  ;;  %s637_s3 = scalar_lea.vmem %s927_s20, 32  ;;  %p989_p0 = scmp.ne.s32.totalorder %s981_s22, 0 }
  0x5c   : > { %v277_v20 = vsub.s32 0, %v911_v17  ;;  %v281_v22 = vsub.s32 1, %v911_v17  ;;  %v490_v60 = vsel %vm299_vm2, 1.0, %v727_v59  ;;  %vm348_vm4 = vcmp.eq.s32.totalorder %v911_v17, 0  ;;  %p638_p8 = scmp.ne.s32.totalorder %s927_s20, %s637_s3  ;;  %s728_s7 = smov [#allocation7]  }
  0x5d   : > { %v227_v6 = vrot.slane %v226_v4, 2  ;;  %v233_v7 = vrot.slane %v232_v5, 2  ;;  %v263_v49 = vrot.slane %v262_v43, 2  ;;  %v269_v50 = vrot.slane %v268_v45, 2  ;;  %s641_s8 = sshll.u32 %s728_s7, 4  ;;  %s642_s8 = int_to_ptr.vmem [resolvable:$false] %s641_s8 }
  0x5e   : > { %v278_v23 = vrot.slane %v224_v21, %v277_v20  ;;  %v282_v24 = vrot.slane %v224_v21, %v281_v22  ;;  %p639_p7 = pnand %p638_p8, %p989_p0  ;;  %s643_s18 = scalar_lea.vmem %s642_s8, 64 }
  0x5f   : > { %v228_v8 = vmax.f32 %v226_v4, %v227_v6  ;;  %v234_v9 = vmax.f32 %v232_v5, %v233_v7  ;;  %v264_v53 = vadd.f32 %v263_v49, %v262_v43  ;;  %v270_v54 = vadd.f32 %v269_v50, %v268_v45  ;;  %p644_p10 = scmp.lt.s32.totalorder %s927_s20, %s642_s8  ;;  %p645_p12 = scmp.lt.s32.totalorder %s643_s18, %s637_s3 }
  0x60   : > { %vm283_vm0 = vcmp.eq.s32.totalorder %v911_v17, %v278_v23  ;;  %vm284_vm1 = vcmp.eq.s32.totalorder %v911_v17, %v282_v24  ;;  %v308_v4 = vrot.slane %v490_v60, %v277_v20  ;;  %v312_v7 = vrot.slane %v490_v60, %v281_v22  ;;  %p640_p4 = pneg %p639_p7 }
  0x61   : > { %v229_v10 = vrot.slane %v228_v8, 1  ;;  %v235_v11 = vrot.slane %v234_v9, 1  ;;  %v285_v28 = vsel %vm283_vm0, %v222_v0, 0.0  ;;  %v286_v30 = vsel %vm284_vm1, %v223_v1, 0.0  ;;  %p646_p1 = por %p645_p12, %p644_p10 }
  0x62   : > { %v287_v33 = vrot.slane %v285_v28, 4  ;;  %v293_v35 = vrot.slane %v286_v30, 4  ;;  %v265_v57 = vrot.slane %v264_v53, 1  ;;  %v271_v61 = vrot.slane %v270_v54, 1 }
  0x63   : > { %v230_v13 = vmax.f32 %v228_v8, %v229_v10  ;;  %v908_v14 = vmax.f32 %v234_v9, %v235_v11  ;;  %p647_p2 = pnand %p646_p1, %p640_p4 }
  0x64   : > { %v288_v39 = vadd.f32 %v287_v33, %v285_v28  ;;  %v294_v41 = vadd.f32 %v293_v35, %v286_v30  ;;  %v266_v5 = vadd.f32 %v265_v57, %v264_v53  ;;  %v272_v8 = vadd.f32 %v271_v61, %v270_v54 }
  0x65   : > { %v237_v15 = vsub.f32 %v222_v0, %v230_v13  ;;  %v238_v16 = vsub.f32 %v223_v1, %v908_v14 }
  0x66   : > { %v289_v47 = vrot.slane %v288_v39, 2  ;;  %v295_v48 = vrot.slane %v294_v41, 2 }
  0x67   : > { %v239_v18 = vmul.f32 1.442695, %v237_v15  ;;  %v241_v19 = vmul.f32 1.442695, %v238_v16 }
  0x68   : > { %v290_v51 = vadd.f32 %v289_v47, %v288_v39  ;;  %v296_v52 = vadd.f32 %v295_v48, %v294_v41 }
  0x69   : > { %569 = vpow2.f32 %v239_v18 }
  0x6a   : > { %571 = vpow2.f32 %v241_v19  ;;  %v291_v55 = vrot.slane %v290_v51, 1  ;;  %v297_v56 = vrot.slane %v296_v52, 1 }
  0x6c   : > { %v292_v0 = vadd.f32 %v291_v55, %v290_v51  ;;  %v298_v2 = vadd.f32 %v297_v56, %v296_v52 }
  0x73   : > { %v570_v25 = vpop.eup %569 }
  0x74   : > { %v572_v26 = vpop.eup %571  ;;  %v243_v27 = vrot.slane %v570_v25, 4 }
  0x75   : > { %v249_v29 = vrot.slane %v572_v26, 4 }
  0x76   : > { %v244_v31 = vadd.f32 %v570_v25, %v243_v27 }
  0x77   : > { %v250_v32 = vadd.f32 %v572_v26, %v249_v29 }
  0x78   : > { %v245_v34 = vrot.slane %v244_v31, 2 }
  0x79   : > { %v251_v36 = vrot.slane %v250_v32, 2 }
  0x7a   : > { %v246_v37 = vadd.f32 %v245_v34, %v244_v31 }
  0x7b   : > { %v252_v38 = vadd.f32 %v251_v36, %v250_v32 }
  0x7c   : > { %v247_v40 = vrot.slane %v246_v37, 1 }
  0x7d   : > { %v253_v42 = vrot.slane %v252_v38, 1 }
  0x7e   : > { %v248_v44 = vadd.f32 %v247_v40, %v246_v37 }
  0x7f   : > { %v254_v46 = vadd.f32 %v253_v42, %v252_v38 }
  0x80   : > { %573 = vlog2.f32 %v248_v44 }
  0x81   : > { %575 = vlog2.f32 %v254_v46 }
  0x8a   : > { %v574_v58 = vpop.eup %573 }
  0x8b   : > { %v576_v62 = vpop.eup %575  ;;  %v256_v63 = vmul.f32 0.6931472, %v574_v58 }
  0x8c   : > { %v258_v1 = vmul.f32 0.6931472, %v576_v62 }
  0x8d   : > { %v259_v3 = vadd.f32 %v256_v63, %v230_v13 }
  0x8e   : > { %v260_v6 = vadd.f32 %v258_v1, %v908_v14 }
  0x8f   : > { %v302_v9 = vsub.f32 %v259_v3, %v292_v0  ;;  %v317_v10 = vmul.f32 8.0, %v259_v3 }
  0x90   : > { %v303_v11 = vsub.f32 %v260_v6, %v298_v2  ;;  %v318_v12 = vmul.f32 8.0, %v260_v6 }
  0x91   : > { %v315_v15 = vmul.f32 %v308_v4, %v302_v9  ;;  %v319_v16 = vsub.f32 %v317_v10, %v266_v5 }
  0x92   : > { %v316_v18 = vmul.f32 %v312_v7, %v303_v11  ;;  %v320_v19 = vsub.f32 %v318_v12, %v272_v8 }
  0x93   : > { %v324_v21 = vsel %vm323_vm3, %v315_v15, 0.0  ;;  %v321_v23 = vmul.f32 %v319_v16, %v308_v4 }
  0x94   : > { %v325_v24 = vsel %vm323_vm3, %v316_v18, 0.0  ;;  %v322_v25 = vmul.f32 %v320_v19, %v312_v7 }
  0x95   : > { %v326_v13 = vadd.f32 %v325_v24, %v324_v21  ;;  %v336_v20 = vsel %vm323_vm3, %v321_v23, 0.0 }
  0x96   : > { %v337_v26 = vsel %vm323_vm3, %v322_v25, 0.0 }
  0x97   : > { %327 = vadd.xlane.f32.xlu0 %v326_v13  ;;  %v338_v14 = vadd.f32 %v337_v26, %v336_v20 }
  0x9b   : > { %339 = vadd.xlane.f32.xlu0 %v338_v14 }
 0x124   : > { %v328_v22 = vpop.xlane.xlu0 %327 }
 0x125   : > { %v329_v27 = vrot.slane %v328_v22, 4 }
 0x127   : > { %v330_v28 = vadd.f32 %v329_v27, %v328_v22 }
 0x128   : > { %v340_v29 = vpop.xlane.xlu0 %339 }
 0x129   : > { %v331_v30 = vrot.slane %v330_v28, 2  ;;  %v341_v31 = vrot.slane %v340_v29, 4 }
 0x12b   : > { %v342_v32 = vadd.f32 %v341_v31, %v340_v29  ;;  %v332_v33 = vadd.f32 %v331_v30, %v330_v28 }
 0x12d   : > { %v343_v34 = vrot.slane %v342_v32, 2  ;;  %v333_v35 = vrot.slane %v332_v33, 1 }
 0x12f   : > { %v344_v36 = vadd.f32 %v343_v34, %v342_v32  ;;  %v334_v37 = vadd.f32 %v333_v35, %v332_v33 }
 0x131   : > { %497 = vpush %v334_v37  ;;  %v345_v38 = vrot.slane %v344_v36, 1 }
 0x133   : > { %v346_v39 = vadd.f32 %v345_v38, %v344_v36 }
 0x135   : > { %499 = vpush %v346_v39 }
 0x162   : > { %s498_s19 = spop %497 }
 0x163   : > { %v349_v40 = vstv %s498_s19 }
 0x166   : > { %s500_s26 = spop %499 }
 0x167   : > { %v350_v41 = vstv %s500_s26 }
 0x168   : > { %v351_v42 = vsel %vm348_vm4, %v349_v40, %v350_v41 }
 0x169   : > { %352 = vst [vmem:[%s219_s30] sm:$0x3] %v351_v42 }
 0x16a   : > { %650 = shalt.err (!%p647_p2)
}
 0x16b   : > { %s651_s15 = scalar_lea.hbm %s925_s25, 32  ;;  %s655_s5 = scalar_lea.hbm %s976_s2, 64 }
 0x16c   : > { %p652_p9 = scmp.ne.s32.totalorder %s925_s25, %s651_s15  ;;  %p656_p6 = scmp.lt.u32.totalorder %s925_s25, %s976_s2 }
 0x16d   : > { %p657_p13 = scmp.lt.u32.totalorder %s655_s5, %s651_s15  ;;  %p659_p8 = scmp.lt.u32.totalorder %s651_s15, %s925_s25 }
 0x16e   : > { %p653_p11 = pnand %p652_p9, %p989_p0 }
 0x16f   : > { %p658_p5 = por %p657_p13, %p656_p6 }
 0x170   : > { %p654_p3 = pneg %p653_p11 }
 0x171   : > { %p660_p7 = por %p659_p8, %p658_p5 }
 0x173   : > { %p661_p4 = pnand %p660_p7, %p654_p3 }
 0x175   : > { %664 = shalt.err (!%p661_p4)
}
 0x176   : > { %505 = dma.vmem_to_hbm [thread:$0]  (%p989_p0), %s927_s20, 32, %s925_s25, %s354_s12  }
 0x177 PF: > { %s380_s21 = sand.u32 1, %s703_s9   ;;  %p990_p10 = scmp.ne.s32.totalorder %s982_s24, 0 }
 0x178   : > { %p991_p12 = scmp.ge.s32.totalorder %s723_s14, 2  ;;  %s381_s19 = scalar_lea.sflag [#allocation4], %s380_s21 }
 0x17a   : > { %p515_p1 = pnand %p991_p12, %p990_p10 }
 0x17c   : > { %698 = dma.done.wait (!%p515_p1), %s381_s19, 32  }
 0x17d   : > { %700 = vsyncadd (!%p515_p1), %s381_s19, 4294967264  ;;  %s21_s14 = sadd.s32 1, %s723_s14   ;;  %s992_s9 = smov %s707_s10 }
 0x17e   : > { %p18_p2 = scmp.ge.s32.totalorder %s21_s14, 4   ;;  %s993_s10 = smov %s711_s11 }
 0x17f   : > { %s994_s11 = smov %s800_s23  ;;  %s995_s12 = smov %s719_s13 }
 0x180   : > { %s996_s13 = smov %s998_s17  ;;  %20 = sbr.rel (!%p18_p2) target bundleno = 8 (0x8), region = 86 }
 0x187   :  { %386 = vsyncpa [#allocation3], 1 }
 0x188   :  { %388 = vsyncpa [#allocation3 + $0x1], 1 }
 0x189   :  { %389 = vsyncpa [#allocation6], 1 }
 0x18a   :  { %391 = vsyncpa [#allocation6 + $0x1], 1 }
 0x18b   :  { %392 = vsyncpa [#allocation4], 1 }
 0x18c   :  { %394 = vsyncpa [#allocation4 + $0x1], 1 }

</bundles_post_ra>
